<compile_context>
chip_gen: v7x
topology: tpu7x:2x2x1
jax: 0.10.0
libtpu: 0.0.40
codegen_flags: <defaults>
</compile_context>

<pallas_src>
import functools
import math

import jax
import jax.numpy as jnp
from jax.experimental import pallas as pl
from jax.experimental.pallas import tpu as pltpu

LANE = 128
_NEG_BIG = -1e30  # bias for padded logit lanes -> exp() == 0 in the softmax


def _round_up(x, m):
    return (x + m - 1) // m * m


def lstm_seq_kernel(x_ref, h0_ref, c0_ref, wx_ref, wh_ref, bg_ref, wo_ref,
                    bo_ref, out_ref, h_ref, c_ref):
    """One timestep of the fused LSTM-cell rollout.

    Grid = (batch_tiles, T).  h_ref / c_ref have a t-invariant block index, so
    they stay VMEM-resident across the whole time loop and carry the
    recurrence; HBM writeback happens once per batch tile.
    """
    t = pl.program_id(1)

    @pl.when(t == 0)
    def _init():
        h_ref[...] = h0_ref[...]
        c_ref[...] = c0_ref[...]

    h = h_ref[...]
    c = c_ref[...]

    # Gate pre-activation: x@Wx + h@Wh + b.  Two tiny MXU dots, f32 accum,
    # operands cast to bf16 in-vreg (free VPU filler under the EUP bottleneck).
    g = (jnp.dot(x_ref[...].astype(wx_ref.dtype), wx_ref[...],
                 preferred_element_type=jnp.float32)
         + jnp.dot(h.astype(wh_ref.dtype), wh_ref[...],
                   preferred_element_type=jnp.float32)
         + bg_ref[...])

    # f_gate == i_gate == o_gate == sigmoid(g) in the reference module, so the
    # sigmoid is evaluated once.  All elementwise / transcendental math in f32.
    s = jax.nn.sigmoid(g)
    z = jnp.tanh(g)
    c_new = (c + z) * s            # == c*f_gate + z*i_gate  (f == i == s)
    h_new = jnp.tanh(c_new) * s    # tanh(cell) * o_gate

    # Output projection + log-softmax.  Padded logit lanes hold -1e30 bias, so
    # max/exp/sum only "see" the real O lanes.
    logits = (jnp.dot(h_new.astype(wo_ref.dtype), wo_ref[...],
                      preferred_element_type=jnp.float32) + bo_ref[...])
    m = jnp.max(logits, axis=-1, keepdims=True)
    shifted = logits - m
    lse = jnp.log(jnp.sum(jnp.exp(shifted), axis=-1, keepdims=True))

    out_ref[...] = shifted - lse
    h_ref[...] = h_new
    c_ref[...] = c_new


def prepare_lstm_params(w_gate, b_gate, w_out, b_out):
    """One-time weight layout / dtype / lane-padding prep (NOT per step).

    w_gate: (cell, input+hidden) torch nn.Linear layout; w_out: (output, cell).
    Returns (wx, wh, bg, wo, bo, C, O):
      wx (I, CP) bf16, wh (CP, CP) bf16, bg (1, CP) f32,
      wo (CP, OP) bf16, bo (1, OP) f32 with padded lanes at -1e30,
    where CP/OP are C/O rounded up to 128 lanes.  Zero padding is exact for
    the gate/output matmuls; padded h/c lanes stay 0 through the recurrence.
    """
    w_gate = jnp.asarray(w_gate, jnp.float32)
    b_gate = jnp.asarray(b_gate, jnp.float32)
    w_out = jnp.asarray(w_out, jnp.float32)
    b_out = jnp.asarray(b_out, jnp.float32)

    C, IH = w_gate.shape
    O, C2 = w_out.shape
    H = C                      # module requires hidden_size == cell_size
    I = IH - H
    assert C2 == C, "module requires input_size == cell_size in its forward"

    CP = _round_up(C, LANE)
    OP = _round_up(O, LANE)

    wx = jnp.zeros((I, CP), jnp.float32).at[:, :C].set(w_gate[:, :I].T)
    wh = jnp.zeros((CP, CP), jnp.float32).at[:H, :C].set(w_gate[:, I:].T)
    wo = jnp.zeros((CP, OP), jnp.float32).at[:C, :O].set(w_out.T)
    bg = jnp.zeros((1, CP), jnp.float32).at[0, :C].set(b_gate)
    bo = jnp.full((1, OP), _NEG_BIG, jnp.float32).at[0, :O].set(b_out)

    return (wx.astype(jnp.bfloat16), wh.astype(jnp.bfloat16), bg,
            wo.astype(jnp.bfloat16), bo, C, O)


@functools.partial(jax.jit, static_argnames=("c_dim", "o_dim", "block_b"))
def _lstm_seq(xs, h0, c0, wx, wh, bg, wo, bo, *, c_dim, o_dim, block_b):
    """Time-fused rollout: xs (T, B, I), state carried in VMEM across T."""
    T, B, I = xs.shape
    CP = wx.shape[1]
    OP = wo.shape[1]

    xs = xs.astype(jnp.float32)
    h0p = jnp.pad(h0.astype(jnp.float32), ((0, 0), (0, CP - h0.shape[1])))
    c0p = jnp.pad(c0.astype(jnp.float32), ((0, 0), (0, CP - c0.shape[1])))

    # Batch tile: biggest sublane-aligned tile that still leaves >= 2 grid
    # steps along the "parallel" axis when B > 8 (so v7x megacore can shard).
    if B <= 8:
        bb = B
    else:
        bb = max(8, min(block_b, _round_up((B + 1) // 2, 8)))
    nb = pl.cdiv(B, bb)
    grid = (nb, T)

    batch3 = lambda f: pl.BlockSpec((None, bb, f), lambda b, t: (t, b, 0))
    batch2 = lambda f: pl.BlockSpec((bb, f), lambda b, t: (b, 0))
    resident = lambda s: pl.BlockSpec(s, lambda b, t: (0, 0))

    out_shapes = (
        jax.ShapeDtypeStruct((T, B, OP), jnp.float32),   # per-step log-softmax
        jax.ShapeDtypeStruct((B, CP), jnp.float32),      # final hidden (padded)
        jax.ShapeDtypeStruct((B, CP), jnp.float32),      # final cell   (padded)
    )
    out, h, c = pl.pallas_call(
        lstm_seq_kernel,
        out_shape=out_shapes,
        grid=grid,
        in_specs=[batch3(I),            # xs   (f32, cast to bf16 in-kernel)
                  batch2(CP),           # h0   (f32, padded)
                  batch2(CP),           # c0   (f32, padded)
                  resident((I, CP)),    # Wx   (bf16, VMEM-resident)
                  resident((CP, CP)),   # Wh   (bf16, VMEM-resident)
                  resident((1, CP)),    # b_gate (f32)
                  resident((CP, OP)),   # Wo   (bf16, VMEM-resident)
                  resident((1, OP))],   # b_out  (f32, padded lanes -1e30)
        out_specs=(batch3(OP), batch2(CP), batch2(CP)),
        input_output_aliases={1: 1, 2: 2},   # update h/c state in place (P8)
        compiler_params=pltpu.CompilerParams(
            dimension_semantics=("parallel", "arbitrary")),
    )(xs, h0p, c0p, wx, wh, bg, wo, bo)

    # Drop the padded lanes (padding columns are zero weights / -inf logits).
    return out[..., :o_dim], h[:, :c_dim], c[:, :c_dim]


def lstm_cell_forward(x, hidden, cell, params, *, block_b=512):
    """Single LSTMCell step -> (output, hidden, cell), like the torch module."""
    wx, wh, bg, wo, bo, C, O = params
    out, h, c = _lstm_seq(x[None], hidden, cell, wx, wh, bg, wo, bo,
                          c_dim=C, o_dim=O, block_b=block_b)
    return out[0], h, c


def lstm_forward_seq(xs, hidden, cell, params, *, block_b=512):
    """Time-fused multi-step rollout; xs is (T, B, input_size)."""
    wx, wh, bg, wo, bo, C, O = params
    return _lstm_seq(xs, hidden, cell, wx, wh, bg, wo, bo,
                     c_dim=C, o_dim=O, block_b=block_b)


def _reference_step(x, h, c, w_gate, b_gate, w_out, b_out):
    combined = jnp.concatenate([x, h], axis=1)
    g = combined @ w_gate.T + b_gate
    s = jax.nn.sigmoid(g)
    z = jnp.tanh(g)
    c_new = c * s + z * s
    h_new = jnp.tanh(c_new) * s
    logits = h_new @ w_out.T + b_out
    return jax.nn.log_softmax(logits, axis=1), h_new, c_new


if __name__ == "__main__":
    batch = 8
    input_size = hidden_size = cell_size = 32   # module requires these equal
    output_size = 16
    seq_len = 4

    key = jax.random.PRNGKey(0)
    kx, kh, kc, kw1, kb1, kw2, kb2 = jax.random.split(key, 7)

    xs = jax.random.normal(kx, (seq_len, batch, input_size), jnp.float32)
    hidden = jax.random.normal(kh, (batch, hidden_size), jnp.float32)
    cell = jax.random.normal(kc, (batch, cell_size), jnp.float32)

    # Deterministic init mimicking nn.Linear (uniform(-1/sqrt(fan_in), +)).
    k_gate = 1.0 / math.sqrt(input_size + hidden_size)
    w_gate = jax.random.uniform(kw1, (cell_size, input_size + hidden_size),
                                jnp.float32, -k_gate, k_gate)
    b_gate = jax.random.uniform(kb1, (cell_size,), jnp.float32, -k_gate, k_gate)
    k_out = 1.0 / math.sqrt(input_size)
    w_out = jax.random.uniform(kw2, (output_size, input_size),
                               jnp.float32, -k_out, k_out)
    b_out = jax.random.uniform(kb2, (output_size,), jnp.float32, -k_out, k_out)

    # Layout / dtype / lane-padding work done once, outside the hot path.
    params = prepare_lstm_params(w_gate, b_gate, w_out, b_out)

    # ---- single step: faithful to the torch module's forward -------------
    out1, h1, c1 = lstm_cell_forward(xs[0], hidden, cell, params)
    jax.block_until_ready((out1, h1, c1))
    out_r, h_r, c_r = _reference_step(xs[0], hidden, cell,
                                      w_gate, b_gate, w_out, b_out)
    # bf16 matmul operands (f32 accumulation) are the sole reason for 3e-2.
    assert jnp.allclose(out1, out_r, atol=3e-2, rtol=3e-2), "output mismatch"
    assert jnp.allclose(h1, h_r, atol=3e-2, rtol=3e-2), "hidden mismatch"
    assert jnp.allclose(c1, c_r, atol=3e-2, rtol=3e-2), "cell mismatch"

    # ---- time-fused rollout: one pallas_call for seq_len steps ------------
    outs, hT, cT = lstm_forward_seq(xs, hidden, cell, params)
    jax.block_until_ready((outs, hT, cT))
    h_r, c_r = hidden, cell
    for t in range(seq_len):
        o_r, h_r, c_r = _reference_step(xs[t], h_r, c_r,
                                        w_gate, b_gate, w_out, b_out)
        assert jnp.allclose(outs[t], o_r, atol=5e-2, rtol=5e-2), f"out[{t}]"
    assert jnp.allclose(hT, h_r, atol=5e-2, rtol=5e-2), "seq hidden mismatch"
    assert jnp.allclose(cT, c_r, atol=5e-2, rtol=5e-2), "seq cell mismatch"

    print("KERNEL_OK")
</pallas_src>

<mosaic_0001>
module attributes {stable_mosaic.version = 11 : i64} {
  func.func @lstm_seq_kernel(%arg0: i32, %arg1: i32, %arg2: memref<1x8x32xf32, #tpu.memory_space<vmem>>, %arg3: memref<8x128xf32, #tpu.memory_space<vmem>>, %arg4: memref<8x128xf32, #tpu.memory_space<vmem>>, %arg5: memref<32x128xbf16, #tpu.memory_space<vmem>>, %arg6: memref<128x128xbf16, #tpu.memory_space<vmem>>, %arg7: memref<1x128xf32, #tpu.memory_space<vmem>>, %arg8: memref<128x128xbf16, #tpu.memory_space<vmem>>, %arg9: memref<1x128xf32, #tpu.memory_space<vmem>>, %arg10: memref<1x8x128xf32, #tpu.memory_space<vmem>>, %arg11: memref<8x128xf32, #tpu.memory_space<vmem>>, %arg12: memref<8x128xf32, #tpu.memory_space<vmem>>) attributes {dimension_semantics = [#tpu.dimension_semantics<parallel>, #tpu.dimension_semantics<arbitrary>], iteration_bounds = array<i64: 1, 1>, scalar_prefetch = 0 : i64, scratch_operands = 0 : i64, tpu.core_type = #tpu.core_type<tc>, window_params = [{transform_indices = @transform_0, window_bounds = array<i64: 1, 8, 32>}, {transform_indices = @transform_1, window_bounds = array<i64: 8, 128>}, {transform_indices = @transform_2, window_bounds = array<i64: 8, 128>}, {pipeline_mode = #tpu.pipeline_mode<synchronous>, transform_indices = @transform_3, window_bounds = array<i64: 32, 128>}, {pipeline_mode = #tpu.pipeline_mode<synchronous>, transform_indices = @transform_4, window_bounds = array<i64: 128, 128>}, {pipeline_mode = #tpu.pipeline_mode<synchronous>, transform_indices = @transform_5, window_bounds = array<i64: 1, 128>}, {pipeline_mode = #tpu.pipeline_mode<synchronous>, transform_indices = @transform_6, window_bounds = array<i64: 128, 128>}, {pipeline_mode = #tpu.pipeline_mode<synchronous>, transform_indices = @transform_7, window_bounds = array<i64: 1, 128>}, {transform_indices = @transform_8, window_bounds = array<i64: 1, 8, 128>}, {transform_indices = @transform_9, window_bounds = array<i64: 8, 128>}, {transform_indices = @transform_10, window_bounds = array<i64: 8, 128>}]} {
    %c0_i32 = arith.constant 0 : i32
    %0 = arith.cmpi eq, %arg1, %c0_i32 : i32
    %1 = arith.extui %0 : i1 to i32
    %c0_i32_0 = arith.constant 0 : i32
    %2 = arith.cmpi ne, %1, %c0_i32_0 : i32
    scf.if %2 {
      %c0_29 = arith.constant 0 : index
      %c0_30 = arith.constant 0 : index
      %48 = vector.load %arg3[%c0_29, %c0_30] : memref<8x128xf32, #tpu.memory_space<vmem>>, vector<8x128xf32>
      %c0_31 = arith.constant 0 : index
      %c0_32 = arith.constant 0 : index
      %49 = vector.load %arg11[%c0_31, %c0_32] : memref<8x128xf32, #tpu.memory_space<vmem>>, vector<8x128xf32>
      tpu.vector_store %arg11[%c0_31, %c0_32], %48 {strides = array<i32>} : memref<8x128xf32, #tpu.memory_space<vmem>>, vector<8x128xf32>,
      %c0_33 = arith.constant 0 : index
      %c0_34 = arith.constant 0 : index
      %50 = vector.load %arg4[%c0_33, %c0_34] : memref<8x128xf32, #tpu.memory_space<vmem>>, vector<8x128xf32>
      %c0_35 = arith.constant 0 : index
      %c0_36 = arith.constant 0 : index
      %51 = vector.load %arg12[%c0_35, %c0_36] : memref<8x128xf32, #tpu.memory_space<vmem>>, vector<8x128xf32>
      tpu.vector_store %arg12[%c0_35, %c0_36], %50 {strides = array<i32>} : memref<8x128xf32, #tpu.memory_space<vmem>>, vector<8x128xf32>,
    } else {
    }
    %c0 = arith.constant 0 : index
    %c0_1 = arith.constant 0 : index
    %3 = vector.load %arg11[%c0, %c0_1] : memref<8x128xf32, #tpu.memory_space<vmem>>, vector<8x128xf32>
    %c0_2 = arith.constant 0 : index
    %c0_3 = arith.constant 0 : index
    %4 = vector.load %arg12[%c0_2, %c0_3] : memref<8x128xf32, #tpu.memory_space<vmem>>, vector<8x128xf32>
    %c0_4 = arith.constant 0 : index
    %c0_5 = arith.constant 0 : index
    %c0_6 = arith.constant 0 : index
    %5 = vector.load %arg2[%c0_4, %c0_5, %c0_6] : memref<1x8x32xf32, #tpu.memory_space<vmem>>, vector<1x8x32xf32>
    %6 = vector.shape_cast %5 : vector<1x8x32xf32> to vector<8x32xf32>
    %7 = arith.truncf %6 : vector<8x32xf32> to vector<8x32xbf16>
    %c0_7 = arith.constant 0 : index
    %c0_8 = arith.constant 0 : index
    %8 = vector.load %arg5[%c0_7, %c0_8] : memref<32x128xbf16, #tpu.memory_space<vmem>>, vector<32x128xbf16>
    %cst = arith.constant dense<0.000000e+00> : vector<8x128xf32>
    %9 = tpu.matmul %7, %8, %cst {dimension_numbers = #tpu.dot_dimension_numbers<[1], [0], [0], [1], [0, 0, 1, 1], [], []>} : vector<8x32xbf16>, vector<32x128xbf16>, vector<8x128xf32> -> vector<8x128xf32>
    %10 = arith.truncf %3 : vector<8x128xf32> to vector<8x128xbf16>
    %c0_9 = arith.constant 0 : index
    %c0_10 = arith.constant 0 : index
    %11 = vector.load %arg6[%c0_9, %c0_10] : memref<128x128xbf16, #tpu.memory_space<vmem>>, vector<128x128xbf16>
    %cst_11 = arith.constant dense<0.000000e+00> : vector<8x128xf32>
    %12 = tpu.matmul %10, %11, %cst_11 {dimension_numbers = #tpu.dot_dimension_numbers<[1], [0], [0], [1], [0, 0, 1, 1], [], []>} : vector<8x128xbf16>, vector<128x128xbf16>, vector<8x128xf32> -> vector<8x128xf32>
    %13 = arith.addf %9, %12 : vector<8x128xf32>
    %c0_12 = arith.constant 0 : index
    %c0_13 = arith.constant 0 : index
    %14 = vector.load %arg7[%c0_12, %c0_13] : memref<1x128xf32, #tpu.memory_space<vmem>>, vector<1x128xf32>
    %15 = vector.broadcast %14 : vector<1x128xf32> to vector<8x128xf32>
    %16 = arith.addf %13, %15 : vector<8x128xf32>
    %17 = arith.negf %16 : vector<8x128xf32>
    %18 = math.exp %17 : vector<8x128xf32>
    %cst_14 = arith.constant 1.000000e+00 : f32
    %19 = vector.broadcast %cst_14 : f32 to vector<8x128xf32>
    %20 = arith.addf %19, %18 : vector<8x128xf32>
    %21 = arith.divf %19, %20 : vector<8x128xf32>
    %22 = math.tanh %16 : vector<8x128xf32>
    %23 = arith.addf %4, %22 : vector<8x128xf32>
    %24 = arith.mulf %23, %21 : vector<8x128xf32>
    %25 = math.tanh %24 : vector<8x128xf32>
    %26 = arith.mulf %25, %21 : vector<8x128xf32>
    %27 = arith.truncf %26 : vector<8x128xf32> to vector<8x128xbf16>
    %c0_15 = arith.constant 0 : index
    %c0_16 = arith.constant 0 : index
    %28 = vector.load %arg8[%c0_15, %c0_16] : memref<128x128xbf16, #tpu.memory_space<vmem>>, vector<128x128xbf16>
    %cst_17 = arith.constant dense<0.000000e+00> : vector<8x128xf32>
    %29 = tpu.matmul %27, %28, %cst_17 {dimension_numbers = #tpu.dot_dimension_numbers<[1], [0], [0], [1], [0, 0, 1, 1], [], []>} : vector<8x128xbf16>, vector<128x128xbf16>, vector<8x128xf32> -> vector<8x128xf32>
    %c0_18 = arith.constant 0 : index
    %c0_19 = arith.constant 0 : index
    %30 = vector.load %arg9[%c0_18, %c0_19] : memref<1x128xf32, #tpu.memory_space<vmem>>, vector<1x128xf32>
    %31 = vector.broadcast %30 : vector<1x128xf32> to vector<8x128xf32>
    %32 = arith.addf %29, %31 : vector<8x128xf32>
    %cst_20 = arith.constant dense<0xFF800000> : vector<8xf32>
    %33 = vector.multi_reduction <maximumf>, %32, %cst_20 [1] : vector<8x128xf32> to vector<8xf32>
    %34 = vector.shape_cast %33 : vector<8xf32> to vector<8x1xf32>
    %35 = vector.broadcast %34 : vector<8x1xf32> to vector<8x128xf32>
    %36 = arith.subf %32, %35 : vector<8x128xf32>
    %37 = math.exp %36 : vector<8x128xf32>
    %cst_21 = arith.constant dense<0.000000e+00> : vector<8xf32>
    %38 = vector.multi_reduction <add>, %37, %cst_21 [1] : vector<8x128xf32> to vector<8xf32>
    %39 = vector.shape_cast %38 : vector<8xf32> to vector<8x1xf32>
    %40 = math.log %39 : vector<8x1xf32>
    %41 = vector.broadcast %40 : vector<8x1xf32> to vector<8x128xf32>
    %42 = arith.subf %36, %41 : vector<8x128xf32>
    %c0_22 = arith.constant 0 : index
    %c0_23 = arith.constant 0 : index
    %c0_24 = arith.constant 0 : index
    %43 = vector.load %arg10[%c0_22, %c0_23, %c0_24] : memref<1x8x128xf32, #tpu.memory_space<vmem>>, vector<1x8x128xf32>
    %44 = vector.shape_cast %43 : vector<1x8x128xf32> to vector<8x128xf32>
    %45 = vector.shape_cast %42 : vector<8x128xf32> to vector<1x8x128xf32>
    tpu.vector_store %arg10[%c0_22, %c0_23, %c0_24], %45 {strides = array<i32>} : memref<1x8x128xf32, #tpu.memory_space<vmem>>, vector<1x8x128xf32>,
    %c0_25 = arith.constant 0 : index
    %c0_26 = arith.constant 0 : index
    %46 = vector.load %arg11[%c0_25, %c0_26] : memref<8x128xf32, #tpu.memory_space<vmem>>, vector<8x128xf32>
    tpu.vector_store %arg11[%c0_25, %c0_26], %26 {strides = array<i32>} : memref<8x128xf32, #tpu.memory_space<vmem>>, vector<8x128xf32>,
    %c0_27 = arith.constant 0 : index
    %c0_28 = arith.constant 0 : index
    %47 = vector.load %arg12[%c0_27, %c0_28] : memref<8x128xf32, #tpu.memory_space<vmem>>, vector<8x128xf32>
    tpu.vector_store %arg12[%c0_27, %c0_28], %24 {strides = array<i32>} : memref<8x128xf32, #tpu.memory_space<vmem>>, vector<8x128xf32>,
    return
  }
  func.func @transform_0(%arg0: i32, %arg1: i32) -> (i32, i32, i32) {
    %c0_i32 = arith.constant 0 : i32
    %c0_i32_0 = arith.constant 0 : i32
    return %arg1, %arg0, %c0_i32 : i32, i32, i32
  }
  func.func @transform_1(%arg0: i32, %arg1: i32) -> (i32, i32) {
    %c0_i32 = arith.constant 0 : i32
    %c0_i32_0 = arith.constant 0 : i32
    return %arg0, %c0_i32 : i32, i32
  }
  func.func @transform_2(%arg0: i32, %arg1: i32) -> (i32, i32) {
    %c0_i32 = arith.constant 0 : i32
    %c0_i32_0 = arith.constant 0 : i32
    return %arg0, %c0_i32 : i32, i32
  }
  func.func @transform_3(%arg0: i32, %arg1: i32) -> (i32, i32) {
    %c0_i32 = arith.constant 0 : i32
    %c0_i32_0 = arith.constant 0 : i32
    %c0_i32_1 = arith.constant 0 : i32
    return %c0_i32, %c0_i32_0 : i32, i32
  }
  func.func @transform_4(%arg0: i32, %arg1: i32) -> (i32, i32) {
    %c0_i32 = arith.constant 0 : i32
    %c0_i32_0 = arith.constant 0 : i32
    %c0_i32_1 = arith.constant 0 : i32
    return %c0_i32, %c0_i32_0 : i32, i32
  }
  func.func @transform_5(%arg0: i32, %arg1: i32) -> (i32, i32) {
    %c0_i32 = arith.constant 0 : i32
    %c0_i32_0 = arith.constant 0 : i32
    %c0_i32_1 = arith.constant 0 : i32
    return %c0_i32, %c0_i32_0 : i32, i32
  }
  func.func @transform_6(%arg0: i32, %arg1: i32) -> (i32, i32) {
    %c0_i32 = arith.constant 0 : i32
    %c0_i32_0 = arith.constant 0 : i32
    %c0_i32_1 = arith.constant 0 : i32
    return %c0_i32, %c0_i32_0 : i32, i32
  }
  func.func @transform_7(%arg0: i32, %arg1: i32) -> (i32, i32) {
    %c0_i32 = arith.constant 0 : i32
    %c0_i32_0 = arith.constant 0 : i32
    %c0_i32_1 = arith.constant 0 : i32
    return %c0_i32, %c0_i32_0 : i32, i32
  }
  func.func @transform_8(%arg0: i32, %arg1: i32) -> (i32, i32, i32) {
    %c0_i32 = arith.constant 0 : i32
    %c0_i32_0 = arith.constant 0 : i32
    return %arg1, %arg0, %c0_i32 : i32, i32, i32
  }
  func.func @transform_9(%arg0: i32, %arg1: i32) -> (i32, i32) {
    %c0_i32 = arith.constant 0 : i32
    %c0_i32_0 = arith.constant 0 : i32
    return %arg0, %c0_i32 : i32, i32
  }
  func.func @transform_10(%arg0: i32, %arg1: i32) -> (i32, i32) {
    %c0_i32 = arith.constant 0 : i32
    %c0_i32_0 = arith.constant 0 : i32
    return %arg0, %c0_i32 : i32, i32
  }
}

</mosaic_0001>

<bundles_post_ra>
// kernel: _lstm_seq.1
= control target key start
LH: loop header
LB: loop body
LE: loop exit
PB: predicated region body
PF: predicated region fallthrough
CT: control target
= control target key end

     0   :  { %16 = vsyncpa [#allocation3], 0  ;;  %s756_s0 = inlined_call_operand.vmem [shape: f32[1,8,32], index: 0, kind: input, shape index: {}]   ;;  %s757_s1 = inlined_call_operand.vmem [shape: f32[8,128], index: 1, kind: input, shape index: {}, may-alias: {1,9}]   ;;  %s758_s2 = inlined_call_operand.vmem [shape: f32[8,128], index: 2, kind: input, shape index: {}, may-alias: {2,10}]   ;;  %s759_s3 = inlined_call_operand.vmem [shape: bf16[32,128], index: 3, kind: input, shape index: {}]   ;;  %s760_s4 = inlined_call_operand.hbm [shape: bf16[128,128], index: 4, kind: input, shape index: {}]   ;;  %s761_s5 = inlined_call_operand.vmem [shape: f32[1,128], index: 5, kind: input, shape index: {}]   ;;  %s762_s6 = inlined_call_operand.hbm [shape: bf16[128,128], index: 6, kind: input, shape index: {}]   ;;  %s763_s7 = inlined_call_operand.vmem [shape: f32[1,128], index: 7, kind: input, shape index: {}]   ;;  %s764_s8 = inlined_call_operand.hbm [shape: f32[1,8,128], index: 8, kind: output, shape index: {0}]   ;;  %s765_s9 = inlined_call_operand.vmem [shape: f32[8,128], index: 9, kind: output, shape index: {1}, may-alias: {1,9}]   ;;  %s766_s10 = inlined_call_operand.vmem [shape: f32[8,128], index: 10, kind: output, shape index: {2}, may-alias: {2,10}]  }
   0x1   :  { %17 = vsyncpa [#allocation6], 0 }
   0x2   :  { %18 = vsyncpa [#allocation4], 0  ;;  %s607_s13 = smov [#allocation2]   ;;  %s535_s17 = scalar_lea.hbm %s760_s4, 1024 }
   0x3   :  { %s32_s14 = sshll.u32 %s607_s13, 4  ;;  %p536_p0 = scmp.ne.s32.totalorder %s760_s4, %s535_s17  ;;  %s33_s14 = int_to_ptr.vmem [resolvable:$true] %s32_s14 }
   0x4   :  { %p539_p1 = scmp.lt.u32.totalorder %s535_s17, %s760_s4 }
   0x6   :  { %p541_p2 = pnand %p539_p1, %p536_p0 }
   0x8   :  { %544 = shalt.err (!%p541_p2)
}
   0x9   :  { %s545_s22 = scalar_lea.vmem %s33_s14, 1024  ;;  %p550_p4 = scmp.lt.s32.totalorder %s33_s14, %s33_s14 }
   0xa   :  { %p546_p3 = scmp.ne.s32.totalorder %s33_s14, %s545_s22  ;;  %p551_p5 = scmp.lt.s32.totalorder %s545_s22, %s545_s22 }
   0xc   :  { %p552_p6 = por %p551_p5, %p550_p4 }
   0xe   :  { %p553_p7 = pnand %p552_p6, %p546_p3 }
  0x10   :  { %556 = shalt.err (!%p553_p7)
}
  0x11   :  { %s608_s23 = smov 64   ;;  %s609_s24 = smov 4  }
  0x12   :  { %38 = dma.hbm_to_vmem [thread:$0]  %s760_s4, 1024, %s33_s14, [#allocation3], %s608_s23, %s608_s23, %s609_s24  }
  0x13   :  { %s610_s27 = smov [#allocation5]   ;;  %s557_s11 = scalar_lea.hbm %s762_s6, 1024 }
  0x14   :  { %s46_s28 = sshll.u32 %s610_s27, 4  ;;  %p558_p8 = scmp.ne.s32.totalorder %s762_s6, %s557_s11  ;;  %s47_s28 = int_to_ptr.vmem [resolvable:$true] %s46_s28 }
  0x15   :  { %p561_p9 = scmp.lt.u32.totalorder %s557_s11, %s762_s6 }
  0x17   :  { %p563_p10 = pnand %p561_p9, %p558_p8 }
  0x19   :  { %566 = shalt.err (!%p563_p10)
}
  0x1a   :  { %s567_s17 = scalar_lea.vmem %s47_s28, 1024  ;;  %p572_p12 = scmp.lt.s32.totalorder %s47_s28, %s47_s28 }
  0x1b   :  { %p568_p11 = scmp.ne.s32.totalorder %s47_s28, %s567_s17  ;;  %p573_p13 = scmp.lt.s32.totalorder %s567_s17, %s567_s17 }
  0x1d   :  { %p574_p0 = por %p573_p13, %p572_p12 }
  0x1f   :  { %p575_p1 = pnand %p574_p0, %p568_p11 }
  0x21   :  { %578 = shalt.err (!%p575_p1)
}
  0x22   :  { %52 = dma.hbm_to_vmem [thread:$0]  %s762_s6, 1024, %s47_s28, [#allocation6], %s608_s23, %s608_s23, %s609_s24  }
  0x23   :  { %601 = dma.done.wait [#allocation3], 1024  }
  0x24   :  { %602 = vsyncadd [#allocation3], 4294966272 }
  0x25   :  { %603 = dma.done.wait [#allocation6], 1024  }
  0x26   :  { %604 = vsyncadd [#allocation6], 4294966272  ;;  %v611_v0 = vmov 0.0   ;;  %vm612_vm0 = vmmov 0   ;;  %v505_v1 = vld [vmem:[#allocation2] sm:$0xff]   ;;  %v506_v2 = vld [vmem:[#allocation2 + $0x8] sm:$0xff]  }
  0x27   :  { %450 = vmatprep.subr.bf16.mxu0 %v611_v0  ;;  %470 = vmatprep.subr.bf16.mxu1 %v611_v0  ;;  %v507_v3 = vld [vmem:[#allocation2 + $0x10] sm:$0xff]   ;;  %v511_v4 = vld [vmem:[%s759_s3] sm:$0xff]   ;;  %v513_v5 = vld [vmem:[%s759_s3 + $0x8] sm:$0xff]   ;;  %vm195_vm1 = vcmask 261120  }
  0x28   :  { %474 = vmatprep.mubr.msk.bf16.mxu1 %vm612_vm0, %v611_v0  ;;  %466 = vmatprep.mubr.msk.bf16.mxu0 %vm612_vm0, %v611_v0  ;;  %v508_v6 = vld [vmem:[#allocation2 + $0x18] sm:$0xff]   ;;  %v72_v7 = vld [vmem:[%s756_s0] sm:$0xff]  ;;  %v510_v10 = vld [vmem:[#allocation2 + $0x28] sm:$0xff]  }
  0x29   :  { %451 = vmatpush3.bf16.msra.mxu0 %v505_v1  ;;  %471 = vmatpush3.bf16.msra.mxu1 %v511_v4  ;;  %v73_v8 = vpack.c.bf16 %v72_v7, %v72_v7  ;;  %v509_v9 = vld [vmem:[#allocation2 + $0x20] sm:$0xff]   ;;  %v512_v11 = vld [vmem:[#allocation2 + $0x30] sm:$0xff]   ;;  %v514_v12 = vld [vmem:[#allocation2 + $0x38] sm:$0xff]  }
  0x2a   :  { %452 = vmatprep.subr.bf16.mxu0 %v611_v0  ;;  %472 = vmatprep.subr.bf16.mxu1 %v611_v0  ;;  %v66_v13 = vld [vmem:[%s757_s1] sm:$0xff]  ;;  %v516_v16 = vld [vmem:[#allocation5 + $0x8] sm:$0xff]   ;;  %v517_v17 = vld [vmem:[#allocation5 + $0x10] sm:$0xff]  }
  0x2b   :  { %v78_v14 = vpack.c.bf16 %v66_v13, %v66_v13  ;;  %v515_v15 = vld [vmem:[#allocation5] sm:$0xff]   ;;  %v518_v18 = vld [vmem:[#allocation5 + $0x18] sm:$0xff]   ;;  %v520_v20 = vld [vmem:[#allocation5 + $0x28] sm:$0xff]  }
  0x2c   :  { %v519_v19 = vld [vmem:[#allocation5 + $0x20] sm:$0xff]   ;;  %v521_v21 = vld [vmem:[#allocation5 + $0x30] sm:$0xff]   ;;  %v522_v22 = vld [vmem:[#allocation5 + $0x38] sm:$0xff]  }
  0x2d   :  { %453 = vmatpush3.bf16.msra.mxu0 %v506_v2  ;;  %473 = vmatpush3.bf16.msra.mxu1 %v513_v5  ;;  %v418_v28 = vld [vmem:[%s761_s5] ss:$0 sm:$0xff] }
  0x2e   :  { %454 = vmatprep.subr.bf16.mxu0 %v611_v0  ;;  %478 = vmatprep.subr.bf16.mxu1 %v611_v0  ;;  %v68_v38 = vld [vmem:[%s758_s2] sm:$0xff]  ;;  %s613_s2 = smov [#allocation7]  }
  0x2f   :  { %v420_v45 = vld [vmem:[%s763_s7] ss:$0 sm:$0xff] }
  0x30   :  { %475 = vmatmul.mubr.msk.bf16.vlgmr.msra.gmra.mrb[0].mxu1 %vm195_vm1, %v73_v8 }
  0x31   :  { %455 = vmatpush3.bf16.msra.mxu0 %v507_v3  ;;  %494 = vmatprep.mubr.msk.bf16.mxu1 %vm612_vm0, %v611_v0 }
  0x32   :  { %456 = vmatprep.subr.bf16.mxu0 %v611_v0  ;;  %479 = vmatpush3.bf16.msra.mxu1 %v515_v15 }
  0x33   :  { %480 = vmatprep.subr.bf16.mxu1 %v611_v0 }
  0x35   :  { %457 = vmatpush3.bf16.msra.mxu0 %v508_v6 }
  0x36   :  { %458 = vmatprep.subr.bf16.mxu0 %v611_v0  ;;  %481 = vmatpush3.bf16.msra.mxu1 %v516_v16 }
  0x37   :  { %482 = vmatprep.subr.bf16.mxu1 %v611_v0 }
  0x39   :  { %459 = vmatpush3.bf16.msra.mxu0 %v509_v9 }
  0x3a   :  { %460 = vmatprep.subr.bf16.mxu0 %v611_v0  ;;  %483 = vmatpush3.bf16.msra.mxu1 %v517_v17 }
  0x3b   :  { %484 = vmatprep.subr.bf16.mxu1 %v611_v0 }
  0x3d   :  { %461 = vmatpush3.bf16.msra.mxu0 %v510_v10 }
  0x3e   :  { %462 = vmatprep.subr.bf16.mxu0 %v611_v0  ;;  %485 = vmatpush3.bf16.msra.mxu1 %v518_v18 }
  0x3f   :  { %486 = vmatprep.subr.bf16.mxu1 %v611_v0 }
  0x41   :  { %463 = vmatpush3.bf16.msra.mxu0 %v512_v11 }
  0x42   :  { %464 = vmatprep.subr.bf16.mxu0 %v611_v0  ;;  %487 = vmatpush3.bf16.msra.mxu1 %v519_v19 }
  0x43   :  { %488 = vmatprep.subr.bf16.mxu1 %v611_v0 }
  0x45   :  { %465 = vmatpush3.bf16.msra.mxu0 %v514_v12 }
  0x46   :  { %489 = vmatpush3.bf16.msra.mxu1 %v520_v20 }
  0x47   :  { %490 = vmatprep.subr.bf16.mxu1 %v611_v0 }
  0x48   :  { %467 = vmatmul.mubr.bf16.vlgmr.msra.gmra.mrb[0].mxu0 %v78_v14 }
  0x4a   :  { %491 = vmatpush3.bf16.msra.mxu1 %v521_v21 }
  0x4b   :  { %492 = vmatprep.subr.bf16.mxu1 %v611_v0 }
  0x4e   :  { %493 = vmatpush3.bf16.msra.mxu1 %v522_v22 }
 0x103   :  { %v233_v23 = vpop.f32.mrb[0].mxu1 }
 0x104   :  { %v476_v24 = vpop.f32.mrb[1].mxu1 }
 0x105   :  { %v236_v25 = vpop.f32.mrb[2].mxu1 }
 0x106   :  { %v477_v26 = vpop.f32.mrb[3].mxu1 }
 0x11b   :  { %v177_v27 = vpop.f32.mrb[0].mxu0 }
 0x11c   :  { %v234_v29 = vadd.f32 %v233_v23, %v177_v27  ;;  %v468_v30 = vpop.f32.mrb[1].mxu0 }
 0x11d   :  { %v180_v31 = vpop.f32.mrb[2].mxu0 }
 0x11e   :  { %v246_v32 = vadd.f32 %v418_v28, %v234_v29  ;;  %v469_v33 = vpop.f32.mrb[3].mxu0 }
 0x120   :  { %v419_v34 = vmul.f32 -1.442695, %v246_v32 }
 0x122   :  { %523 = vpow2.f32 %v419_v34 }
 0x123   :  { %525 = vtanh.f32 %v246_v32 }
 0x12c   :  { %v524_v35 = vpop.eup %523 }
 0x12d   :  { %v250_v36 = vadd.f32 1.0, %v524_v35  ;;  %v526_v37 = vpop.eup %525 }
 0x12e   :  { %v254_v39 = vadd.f32 %v526_v37, %v68_v38 }
 0x12f   :  { %527 = vrcp.f32 %v250_v36 }
 0x139   :  { %v528_v40 = vpop.eup %527 }
 0x13a   :  { %v255_v41 = vmul.f32 %v528_v40, %v254_v39 }
 0x13c   :  { %529 = vtanh.f32 %v255_v41  ;;  %382 = vst [vmem:[%s766_s10] sm:$0xff] %v255_v41 }
 0x146   :  { %v530_v42 = vpop.eup %529 }
 0x147   :  { %v257_v43 = vmul.f32 %v530_v42, %v528_v40 }
 0x149   :  { %v258_v44 = vpack.c.bf16 %v257_v43, %v257_v43  ;;  %381 = vst [vmem:[%s765_s9] sm:$0xff] %v257_v43  ;;  %s389_s9 = sshll.u32 %s613_s2, 4  ;;  %s390_s9 = int_to_ptr.vmem [resolvable:$true] %s389_s9 }
 0x14a   :  { %s579_s7 = scalar_lea.vmem %s390_s9, 128  ;;  %p584_p3 = scmp.lt.s32.totalorder %s390_s9, %s390_s9 }
 0x14b   :  { %495 = vmatmul.mubr.bf16.vlgmr.msra.gmra.mrb[4].mxu1 %v258_v44  ;;  %p580_p2 = scmp.ne.s32.totalorder %s390_s9, %s579_s7  ;;  %p585_p4 = scmp.lt.s32.totalorder %s579_s7, %s579_s7 }
 0x14d   :  { %p586_p5 = por %p585_p4, %p584_p3 }
 0x14f   :  { %p587_p6 = pnand %p586_p5, %p580_p2 }
 0x21e   :  { %v364_v46 = vpop.f32.mrb[4].mxu1 }
 0x21f   :  { %v365_v47 = vadd.f32 %v420_v45, %v364_v46  ;;  %v496_v48 = vpop.f32.mrb[5].mxu1 }
 0x220   :  { %v367_v49 = vpop.f32.mrb[6].mxu1 }
 0x221   :  { %370 = vmax.xlane.f32.xlu0 %v365_v47  ;;  %v497_v50 = vpop.f32.mrb[7].mxu1 }
 0x2ae   :  { %v371_v51 = vpop.xlane.xlu0 %370 }
 0x2af   :  { %v372_v52 = vsub.f32 %v365_v47, %v371_v51 }
 0x2b1   :  { %v373_v53 = vmul.f32 1.442695, %v372_v52 }
 0x2b3   :  { %531 = vpow2.f32 %v373_v53 }
 0x2bd   :  { %v532_v54 = vpop.eup %531 }
 0x2be   :  { %375 = vadd.xlane.f32.xlu0 %v532_v54 }
 0x34b   :  { %v376_v55 = vpop.xlane.xlu0 %375 }
 0x34c   :  { %533 = vlog2.f32 %v376_v55 }
 0x356   :  { %v534_v56 = vpop.eup %533 }
 0x357   :  { %v378_v57 = vmul.f32 0.6931472, %v534_v56 }
 0x359   :  { %v379_v58 = vsub.f32 %v372_v52, %v378_v57 }
 0x35b   :  { %380 = vst [vmem:[#allocation7] sm:$0xff] %v379_v58 }
 0x35c   :  { %590 = shalt.err (!%p587_p6)
}
 0x35d   :  { %s591_s12 = scalar_lea.hbm %s764_s8, 128 }
 0x35e   :  { %p592_p7 = scmp.ne.s32.totalorder %s764_s8, %s591_s12  ;;  %p595_p8 = scmp.lt.u32.totalorder %s591_s12, %s764_s8 }
 0x360   :  { %p597_p9 = pnand %p595_p8, %p592_p7 }
 0x362   :  { %600 = shalt.err (!%p597_p9)
}
 0x363   :  { %392 = dma.vmem_to_hbm [thread:$0]  %s390_s9, 128, %s764_s8, [#allocation4]  }
 0x364   :  { %605 = dma.done.wait [#allocation4], 128  }
 0x365   :  { %606 = vsyncadd [#allocation4], 4294967168 }
 0x366   :  { %404 = vsyncpa [#allocation3], 1 }
 0x367   :  { %405 = vsyncpa [#allocation6], 1 }
 0x368   :  { %406 = vsyncpa [#allocation4], 1 }

</bundles_post_ra>
